<compile_context>
chip_gen: v6e
topology: v6e:2x2x1
jax: 0.10.0
libtpu: 0.0.40
codegen_flags: <defaults>
</compile_context>

<pallas_src>
import functools

import jax
import jax.numpy as jnp
from jax.experimental import pallas as pl
from jax.experimental.pallas import tpu as pltpu


def _convt_sigmoid_kernel(xt_ref, wb_ref, o_ref, *,
                          k_w, c_in, c_out, stride_w, w_in, w_pad):
    # xt_ref : (W_in, C_in)                 VMEM   input, width on sublanes
    # wb_ref : (K_w*C_in*C_out + C_out,)    SMEM   flat weights, then bias
    # o_ref  : (C_out, W_PAD)               VMEM   lane-dense output slab
    x = xt_ref[...].astype(jnp.float32)                       # single whole-tile load

    # In-kernel scatter masks: lane == iw*stride + kw  (pure VPU iota/compare).
    lane = jax.lax.broadcasted_iota(jnp.int32, (w_in, w_pad), 1)
    row = jax.lax.broadcasted_iota(jnp.int32, (w_in, w_pad), 0)

    # Broadcast each input-channel column across output lanes exactly once.
    x_b = [jnp.broadcast_to(x[:, ic:ic + 1], (w_in, w_pad)) for ic in range(c_in)]

    # masked_x[kw][ic][iw, lane] = x[iw, ic] if lane == iw*stride_w + kw else 0
    masked_x = []
    for kw in range(k_w):
        mask = (lane == row * stride_w + kw).astype(jnp.float32)   # (W_in, W_PAD)
        masked_x.append([mask * x_b[ic] for ic in range(c_in)])

    b_off = k_w * c_in * c_out
    for oc in range(c_out):
        spread = None
        for kw in range(k_w):
            for ic in range(c_in):
                # channel contraction via scalar-broadcast VPU FMAs (no MXU)
                term = masked_x[kw][ic] * wb_ref[(kw * c_in + ic) * c_out + oc]
                spread = term if spread is None else spread + term
        # sublane (XLU) reduce collapses the W_in axis -> one output row
        row_v = jnp.sum(spread, axis=0, keepdims=True) + wb_ref[b_off + oc]  # (1, W_PAD)
        o_ref[oc:oc + 1, :] = jax.nn.sigmoid(row_v).astype(o_ref.dtype)


def conv_transpose_sigmoid(x_nchw, weight, bias, *, stride=(5, 5)):
    """x_nchw: (1, C_in, 1, W_in); weight: (C_in, C_out, 1, K_w); bias: (C_out,)."""
    n, c_in, h, w_in = x_nchw.shape
    assert n == 1 and h == 1, "kernel specialized to N=1, H=1 (as in the module)"
    wc_in, c_out, k_h, k_w = weight.shape
    assert wc_in == c_in and k_h == 1
    stride_h, stride_w = stride
    h_out = (h - 1) * stride_h + k_h                 # = 1
    w_out = (w_in - 1) * stride_w + k_w              # = 47 for W_in=10
    w_pad = max(128, ((w_out + 127) // 128) * 128)   # lane-dense output slab

    # Input with width on sublanes so each pixel broadcasts along output lanes.
    xt = x_nchw.reshape(c_in, w_in).T.astype(jnp.float32)                    # (W_in, C_in)

    # Tiny params -> one flat 1-D SMEM ref: weights (kw, ic, oc order) then bias.
    w_flat = jnp.transpose(weight[:, :, 0, :], (2, 0, 1)).reshape(-1).astype(jnp.float32)
    wb = jnp.concatenate([w_flat, bias.reshape(-1).astype(jnp.float32)])     # (10,)

    kernel = functools.partial(_convt_sigmoid_kernel,
                               k_w=k_w, c_in=c_in, c_out=c_out,
                               stride_w=stride_w, w_in=w_in, w_pad=w_pad)

    flops = (k_w * w_in * w_pad                      # iota compares -> masks
             + k_w * c_in * w_in * w_pad             # mask * x
             + 2 * c_out * k_w * c_in * w_in * w_pad  # channel-mix FMAs
             + c_out * w_in * w_pad                  # sublane reduction
             + 2 * c_out * w_pad)                    # bias add + store scale
    bytes_accessed = (xt.size + wb.size + c_out * w_pad) * 4

    out2 = pl.pallas_call(
        kernel,
        out_shape=jax.ShapeDtypeStruct((c_out, w_pad), jnp.float32),
        in_specs=[
            pl.BlockSpec(memory_space=pltpu.MemorySpace.VMEM),   # xt
            pl.BlockSpec(memory_space=pltpu.MemorySpace.SMEM),   # weights + bias
        ],
        out_specs=pl.BlockSpec(memory_space=pltpu.MemorySpace.VMEM),
        cost_estimate=pl.CostEstimate(flops=flops,
                                      transcendentals=c_out * w_pad,
                                      bytes_accessed=bytes_accessed),
    )(xt, wb)

    # Slice the padded lanes off and restore NCHW.
    return out2[:, :w_out].reshape(1, c_out, h_out, w_out)


def _reference(x_nchw, weight, bias, stride=(5, 5)):
    """Plain-JAX reference of ConvTranspose2d + sigmoid for the specialized shapes."""
    n, c_in, h, w_in = x_nchw.shape
    _, c_out, k_h, k_w = weight.shape
    sw = stride[1]
    w_out = (w_in - 1) * sw + k_w
    out = jnp.broadcast_to(bias.reshape(1, c_out, 1, 1),
                           (n, c_out, 1, w_out)).astype(jnp.float32)
    for iw in range(w_in):
        for kw in range(k_w):
            ow = iw * sw + kw
            contrib = jnp.einsum("ni,io->no",
                                 x_nchw[:, :, 0, iw], weight[:, :, 0, kw])
            out = out.at[:, :, 0, ow].add(contrib)
    return jax.nn.sigmoid(out)


if __name__ == "__main__":
    key = jax.random.PRNGKey(0)
    kx, kw_, kb = jax.random.split(key, 3)

    # Shapes implied by the module: x1 = (1, 2, 1, 10), ConvTranspose2d(2, 2, (1, 2))
    x1 = jax.random.normal(kx, (1, 2, 1, 10), dtype=jnp.float32)
    # PyTorch ConvTranspose2d weight layout: (C_in, C_out, K_h, K_w)
    fan = 2 * 1 * 2
    bound = 1.0 / (fan ** 0.5)
    weight = jax.random.uniform(kw_, (2, 2, 1, 2), minval=-bound, maxval=bound,
                                dtype=jnp.float32)
    bias = jax.random.uniform(kb, (2,), minval=-bound, maxval=bound,
                              dtype=jnp.float32)

    out = conv_transpose_sigmoid(x1, weight, bias, stride=(5, 5))
    out = jax.block_until_ready(out)

    ref = _reference(x1, weight, bias, stride=(5, 5))
    assert out.shape == (1, 2, 1, 47), out.shape
    assert jnp.allclose(out, ref, atol=1e-5, rtol=1e-5), "mismatch vs reference"

    print("KERNEL_OK")
</pallas_src>

<mosaic_0001>
module attributes {stable_mosaic.version = 11 : i64} {
  func.func @_convt_sigmoid_kernel(%arg0: memref<10x2xf32, #tpu.memory_space<vmem>>, %arg1: memref<10xf32, #tpu.memory_space<smem>>, %arg2: memref<2x128xf32, #tpu.memory_space<vmem>>) attributes {dimension_semantics = [], scalar_prefetch = 0 : i64, scratch_operands = 0 : i64, tpu.core_type = #tpu.core_type<tc>} {
    %c0 = arith.constant 0 : index
    %c0_0 = arith.constant 0 : index
    %0 = vector.load %arg0[%c0, %c0_0] : memref<10x2xf32, #tpu.memory_space<vmem>>, vector<10x2xf32>
    %1 = tpu.iota {dimensions = array<i32: 1>} : vector<10x128xi32>
    %2 = tpu.iota {dimensions = array<i32: 0>} : vector<10x128xi32>
    %3 = vector.extract_strided_slice %0 {offsets = [0, 0], sizes = [10, 1], strides = [1, 1]} : vector<10x2xf32> to vector<10x1xf32>
    %4 = vector.shape_cast %3 : vector<10x1xf32> to vector<10x1xf32>
    %5 = vector.broadcast %4 : vector<10x1xf32> to vector<10x128xf32>
    %6 = vector.extract_strided_slice %0 {offsets = [0, 1], sizes = [10, 1], strides = [1, 1]} : vector<10x2xf32> to vector<10x1xf32>
    %7 = vector.shape_cast %6 : vector<10x1xf32> to vector<10x1xf32>
    %8 = vector.broadcast %7 : vector<10x1xf32> to vector<10x128xf32>
    %c5_i32 = arith.constant 5 : i32
    %9 = vector.broadcast %c5_i32 : i32 to vector<10x128xi32>
    %10 = arith.muli %2, %9 : vector<10x128xi32>
    %c0_i32 = arith.constant 0 : i32
    %11 = vector.broadcast %c0_i32 : i32 to vector<10x128xi32>
    %12 = arith.addi %10, %11 : vector<10x128xi32>
    %13 = arith.cmpi eq, %1, %12 : vector<10x128xi32>
    %14 = arith.extui %13 : vector<10x128xi1> to vector<10x128xi32>
    %15 = arith.sitofp %14 : vector<10x128xi32> to vector<10x128xf32>
    %16 = arith.mulf %15, %5 : vector<10x128xf32>
    %17 = arith.mulf %15, %8 : vector<10x128xf32>
    %c5_i32_1 = arith.constant 5 : i32
    %18 = vector.broadcast %c5_i32_1 : i32 to vector<10x128xi32>
    %19 = arith.muli %2, %18 : vector<10x128xi32>
    %c1_i32 = arith.constant 1 : i32
    %20 = vector.broadcast %c1_i32 : i32 to vector<10x128xi32>
    %21 = arith.addi %19, %20 : vector<10x128xi32>
    %22 = arith.cmpi eq, %1, %21 : vector<10x128xi32>
    %23 = arith.extui %22 : vector<10x128xi1> to vector<10x128xi32>
    %24 = arith.sitofp %23 : vector<10x128xi32> to vector<10x128xf32>
    %25 = arith.mulf %24, %5 : vector<10x128xf32>
    %26 = arith.mulf %24, %8 : vector<10x128xf32>
    %c0_2 = arith.constant 0 : index
    %27 = memref.load %arg1[%c0_2] : memref<10xf32, #tpu.memory_space<smem>>
    %28 = vector.broadcast %27 : f32 to vector<10x128xf32>
    %29 = arith.mulf %16, %28 : vector<10x128xf32>
    %c2 = arith.constant 2 : index
    %30 = memref.load %arg1[%c2] : memref<10xf32, #tpu.memory_space<smem>>
    %31 = vector.broadcast %30 : f32 to vector<10x128xf32>
    %32 = arith.mulf %17, %31 : vector<10x128xf32>
    %33 = arith.addf %29, %32 : vector<10x128xf32>
    %c4 = arith.constant 4 : index
    %34 = memref.load %arg1[%c4] : memref<10xf32, #tpu.memory_space<smem>>
    %35 = vector.broadcast %34 : f32 to vector<10x128xf32>
    %36 = arith.mulf %25, %35 : vector<10x128xf32>
    %37 = arith.addf %33, %36 : vector<10x128xf32>
    %c6 = arith.constant 6 : index
    %38 = memref.load %arg1[%c6] : memref<10xf32, #tpu.memory_space<smem>>
    %39 = vector.broadcast %38 : f32 to vector<10x128xf32>
    %40 = arith.mulf %26, %39 : vector<10x128xf32>
    %41 = arith.addf %37, %40 : vector<10x128xf32>
    %cst = arith.constant dense<0.000000e+00> : vector<128xf32>
    %42 = vector.multi_reduction <add>, %41, %cst [0] : vector<10x128xf32> to vector<128xf32>
    %43 = vector.shape_cast %42 : vector<128xf32> to vector<1x128xf32>
    %c8 = arith.constant 8 : index
    %44 = memref.load %arg1[%c8] : memref<10xf32, #tpu.memory_space<smem>>
    %45 = vector.broadcast %44 : f32 to vector<1x128xf32>
    %46 = arith.addf %43, %45 : vector<1x128xf32>
    %47 = arith.negf %46 : vector<1x128xf32>
    %48 = math.exp %47 : vector<1x128xf32>
    %cst_3 = arith.constant 1.000000e+00 : f32
    %49 = vector.broadcast %cst_3 : f32 to vector<1x128xf32>
    %50 = arith.addf %49, %48 : vector<1x128xf32>
    %51 = arith.divf %49, %50 : vector<1x128xf32>
    %c0_4 = arith.constant 0 : index
    %c0_5 = arith.constant 0 : index
    %52 = vector.load %arg2[%c0_4, %c0_5] : memref<2x128xf32, #tpu.memory_space<vmem>>, vector<1x128xf32>
    tpu.vector_store %arg2[%c0_4, %c0_5], %51 {strides = array<i32>} : memref<2x128xf32, #tpu.memory_space<vmem>>, vector<1x128xf32>,
    %c1 = arith.constant 1 : index
    %53 = memref.load %arg1[%c1] : memref<10xf32, #tpu.memory_space<smem>>
    %54 = vector.broadcast %53 : f32 to vector<10x128xf32>
    %55 = arith.mulf %16, %54 : vector<10x128xf32>
    %c3 = arith.constant 3 : index
    %56 = memref.load %arg1[%c3] : memref<10xf32, #tpu.memory_space<smem>>
    %57 = vector.broadcast %56 : f32 to vector<10x128xf32>
    %58 = arith.mulf %17, %57 : vector<10x128xf32>
    %59 = arith.addf %55, %58 : vector<10x128xf32>
    %c5 = arith.constant 5 : index
    %60 = memref.load %arg1[%c5] : memref<10xf32, #tpu.memory_space<smem>>
    %61 = vector.broadcast %60 : f32 to vector<10x128xf32>
    %62 = arith.mulf %25, %61 : vector<10x128xf32>
    %63 = arith.addf %59, %62 : vector<10x128xf32>
    %c7 = arith.constant 7 : index
    %64 = memref.load %arg1[%c7] : memref<10xf32, #tpu.memory_space<smem>>
    %65 = vector.broadcast %64 : f32 to vector<10x128xf32>
    %66 = arith.mulf %26, %65 : vector<10x128xf32>
    %67 = arith.addf %63, %66 : vector<10x128xf32>
    %cst_6 = arith.constant dense<0.000000e+00> : vector<128xf32>
    %68 = vector.multi_reduction <add>, %67, %cst_6 [0] : vector<10x128xf32> to vector<128xf32>
    %69 = vector.shape_cast %68 : vector<128xf32> to vector<1x128xf32>
    %c9 = arith.constant 9 : index
    %70 = memref.load %arg1[%c9] : memref<10xf32, #tpu.memory_space<smem>>
    %71 = vector.broadcast %70 : f32 to vector<1x128xf32>
    %72 = arith.addf %69, %71 : vector<1x128xf32>
    %73 = arith.negf %72 : vector<1x128xf32>
    %74 = math.exp %73 : vector<1x128xf32>
    %cst_7 = arith.constant 1.000000e+00 : f32
    %75 = vector.broadcast %cst_7 : f32 to vector<1x128xf32>
    %76 = arith.addf %75, %74 : vector<1x128xf32>
    %77 = arith.divf %75, %76 : vector<1x128xf32>
    %c1_8 = arith.constant 1 : index
    %c0_9 = arith.constant 0 : index
    %78 = vector.load %arg2[%c1_8, %c0_9] : memref<2x128xf32, #tpu.memory_space<vmem>>, vector<1x128xf32>
    tpu.vector_store %arg2[%c1_8, %c0_9], %77 {strides = array<i32>} : memref<2x128xf32, #tpu.memory_space<vmem>>, vector<1x128xf32>,
    return
  }
}

</mosaic_0001>

<bundles_post_ra>
// kernel: tpu_custom_call.1
= control target key start
LH: loop header
LB: loop body
LE: loop exit
PB: predicated region body
PF: predicated region fallthrough
CT: control target
= control target key end

     0   :  { %7 = vsyncpa [#allocation4], 0  ;;  %s296_s0 = inlined_call_operand.vmem [shape: f32[10,2], index: 0, kind: input, shape index: {}]   ;;  %s297_s1 = inlined_call_operand.vmem [shape: f32[10], index: 1, kind: input, shape index: {}]   ;;  %s298_s2 = inlined_call_operand.hbm [shape: f32[2,128], index: 2, kind: output, shape index: {}]  }
   0x1   :  { %8 = vsyncpa [#allocation3], 0  ;;  %s17_s11 = sshll.u32 %s297_s1, 4  ;;  %s18_s11 = int_to_ptr.vmem [resolvable:$true] %s17_s11 }
   0x2   :  { %s202_s12 = scalar_lea.vmem %s18_s11, 16  ;;  %p207_p1 = scmp.lt.s32.totalorder %s18_s11, %s18_s11 }
   0x3   :  { %p203_p0 = scmp.ne.s32.totalorder %s18_s11, %s202_s12  ;;  %p208_p2 = scmp.lt.s32.totalorder %s202_s12, %s202_s12 }
   0x5   :  { %p209_p3 = por %p208_p2, %p207_p1 }
   0x7   :  { %p210_p4 = pnand %p209_p3, %p203_p0 }
   0x9   :  { %213 = shalt.err (!%p210_p4)
}
   0xa   :  { %s238_s13 = smov [#allocation2]  }
   0xb   :  { %20 = dma.vmem_to_smem %s18_s11, 16, %s238_s13, [#allocation4]  }
   0xc   :  { %234 = dma.done.wait [#allocation4], 16  }
   0xd   :  { %235 = vsyncadd [#allocation4], 4294967280 }
   0xe   :  { %24 = sfence }
   0xf   :  { %v26_v0 = vld [vmem:[%s296_s0 + $0x8] sm:$0x3]  ;;  %v25_v1 = vld [vmem:[%s296_s0] sm:$0xff]  ;;  %v239_v2 = vmov 0   ;;  %v240_v3 = vmov 1   ;;  %v27_v4 = vlaneseq  ;;  %s267_s1 = sld [smem:[#allocation2]] }
  0x10   :  { %192 = vset.pattern.permute.xlu1 %v239_v2  ;;  %190 = vset.pattern.permute.xlu0 %v239_v2  ;;  %s269_s18 = sld [smem:[#allocation2 + $0x2]]  ;;  %v241_v14 = vmov 0.0   ;;  %vm96_vm4 = vcmask 1041408   ;;  %s242_s26 = smov [#allocation5]  }
  0x11   :  { %39 = vperm.xlu0 %190, %v26_v0   ;;  %34 = vperm.xlu1 %192, %v25_v1   ;;  %v30_v5 = vshrl.u32 %v27_v4, 7  ;;  %v28_v8 = vand.u32 127, %v27_v4  ;;  %s271_s0 = sld [smem:[#allocation2 + $0x4]]  ;;  %s161_s27 = sshll.u32 %s242_s26, 4  ;;  %s162_s27 = int_to_ptr.vmem [resolvable:$true] %s161_s27 }
  0x12   :  { %s273_s19 = sld [smem:[#allocation2 + $0x6]]  ;;  %s214_s28 = scalar_lea.vmem %s162_s27, 32 }
  0x13   :  { %v31_v6 = vadd.s32 8, %v30_v5  ;;  %v50_v9 = vmul.u32 5, %v30_v5  ;;  %s275_s20 = sld [smem:[#allocation2 + $0x1]]  ;;  %p215_p5 = scmp.ne.s32.totalorder %s162_s27, %s214_s28 }
  0x14   :  { %s277_s21 = sld [smem:[#allocation2 + $0x3]]  ;;  %p219_p6 = scmp.lt.s32.totalorder %s162_s27, %s162_s27 }
  0x15   :  { %191 = vset.pattern.permute.xlu0 %v240_v3  ;;  %193 = vset.pattern.permute.xlu1 %v240_v3  ;;  %v51_v7 = vmul.u32 5, %v31_v6  ;;  %v62_v11 = vadd.s32 1, %v50_v9  ;;  %s279_s22 = sld [smem:[#allocation2 + $0x5]]  ;;  %vm52_vm1 = vcmp.eq.s32.totalorder %v28_v8, %v50_v9  ;;  %v75_v19 = vstv %s267_s1  ;;  %p220_p7 = scmp.lt.s32.totalorder %s214_s28, %s214_s28 }
  0x16   :  { %47 = vperm.xlu0 %191, %v26_v0   ;;  %43 = vperm.xlu1 %193, %v25_v1   ;;  %s281_s23 = sld [smem:[#allocation2 + $0x7]]  ;;  %v170_v16 = vsel %vm52_vm1, 1.0, %v241_v14  ;;  %v79_v23 = vstv %s269_s18 }
  0x17   :  { %v63_v10 = vadd.s32 1, %v51_v7  ;;  %vm53_vm0 = vcmp.eq.s32.totalorder %v28_v8, %v51_v7  ;;  %vm64_vm3 = vcmp.eq.s32.totalorder %v28_v8, %v62_v11  ;;  %v85_v24 = vstv %s271_s0  ;;  %s177_s24 = sld [smem:[#allocation2 + $0x8]]  ;;  %p221_p8 = por %p220_p7, %p219_p6 }
  0x18   :  { %v171_v15 = vsel %vm53_vm0, 1.0, %v241_v14  ;;  %v172_v22 = vsel %vm64_vm3, 1.0, %v241_v14  ;;  %v91_v25 = vstv %s273_s19  ;;  %s183_s25 = sld [smem:[#allocation2 + $0x9]] }
  0x19   :  { %vm65_vm2 = vcmp.eq.s32.totalorder %v28_v8, %v63_v10  ;;  %v116_v20 = vstv %s275_s20  ;;  %p222_p9 = pnand %p221_p8, %p215_p5 }
  0x1a   :  { %v173_v18 = vsel %vm65_vm2, 1.0, %v241_v14  ;;  %v120_v26 = vstv %s277_s21 }
  0x1b   :  { %v126_v30 = vstv %s279_s22 }
  0x1c   :  { %v132_v35 = vstv %s281_s23 }
  0x8c   :  { %v40_v12 = vpop.permute.xlu0 %39  ;;  %v35_v13 = vpop.permute.xlu1 %34 }
  0x8d   :  { %v59_v17 = vmul.f32 %v171_v15, %v40_v12  ;;  %v58_v21 = vmul.f32 %v170_v16, %v35_v13  ;;  %v71_v29 = vmul.f32 %v173_v18, %v40_v12  ;;  %v70_v36 = vmul.f32 %v172_v22, %v35_v13 }
  0x8f   :  { %v77_v33 = vmul.f32 %v75_v19, %v59_v17  ;;  %v118_v34 = vmul.f32 %v116_v20, %v59_v17  ;;  %v76_v40 = vmul.f32 %v75_v19, %v58_v21  ;;  %v117_v41 = vmul.f32 %v116_v20, %v58_v21 }
  0x90   :  { %v87_v45 = vmul.f32 %v85_v24, %v71_v29  ;;  %v128_v46 = vmul.f32 %v126_v30, %v71_v29  ;;  %v86_v49 = vmul.f32 %v85_v24, %v70_v36  ;;  %v127_v50 = vmul.f32 %v126_v30, %v70_v36 }
  0x91   :  { %v48_v27 = vpop.permute.xlu0 %47  ;;  %v44_v28 = vpop.permute.xlu1 %43 }
  0x92   :  { %v61_v31 = vmul.f32 %v171_v15, %v48_v27  ;;  %v60_v32 = vmul.f32 %v170_v16, %v44_v28  ;;  %v73_v37 = vmul.f32 %v173_v18, %v48_v27  ;;  %v72_v42 = vmul.f32 %v172_v22, %v44_v28 }
  0x93   :  { %v106_v15 = vstv %s177_s24  ;;  %v146_v16 = vstv %s183_s25 }
  0x94   :  { %v81_v38 = vmul.f32 %v79_v23, %v61_v31  ;;  %v122_v39 = vmul.f32 %v120_v26, %v61_v31  ;;  %v80_v43 = vmul.f32 %v79_v23, %v60_v32  ;;  %v121_v44 = vmul.f32 %v120_v26, %v60_v32 }
  0x95   :  { %v93_v54 = vmul.f32 %v91_v25, %v73_v37  ;;  %v134_v56 = vmul.f32 %v132_v35, %v73_v37  ;;  %v92_v58 = vmul.f32 %v91_v25, %v72_v42  ;;  %v133_v60 = vmul.f32 %v132_v35, %v72_v42 }
  0x96   :  { %v83_v47 = vadd.f32 %v81_v38, %v77_v33  ;;  %v124_v48 = vadd.f32 %v122_v39, %v118_v34  ;;  %v82_v51 = vadd.f32 %v80_v43, %v76_v40  ;;  %v123_v52 = vadd.f32 %v121_v44, %v117_v41 }
  0x98   :  { %v89_v53 = vadd.f32 %v87_v45, %v83_v47  ;;  %v130_v55 = vadd.f32 %v128_v46, %v124_v48  ;;  %v88_v57 = vadd.f32 %v86_v49, %v82_v51  ;;  %v129_v59 = vadd.f32 %v127_v50, %v123_v52 }
  0x9a   :  { %v95_v61 = vadd.f32 %v93_v54, %v89_v53  ;;  %v136_v62 = vadd.f32 %v134_v56, %v130_v55  ;;  %v94_v63 = vadd.f32 %v92_v58, %v88_v57  ;;  %v135_v0 = vadd.f32 %v133_v60, %v129_v59 }
  0x9c   :  { %v97_v1 = vsel %vm96_vm4, %v95_v61, 0.0  ;;  %v137_v2 = vsel %vm96_vm4, %v136_v62, 0.0 }
  0x9d   :  { %v98_v3 = vadd.f32 %v97_v1, %v94_v63  ;;  %v138_v4 = vadd.f32 %v137_v2, %v135_v0 }
  0x9f   :  { %v99_v5 = vrot.slane %v98_v3, 4  ;;  %v139_v6 = vrot.slane %v138_v4, 4 }
  0xa1   :  { %v100_v7 = vadd.f32 %v99_v5, %v98_v3  ;;  %v140_v8 = vadd.f32 %v139_v6, %v138_v4 }
  0xa3   :  { %v101_v9 = vrot.slane %v100_v7, 2  ;;  %v141_v10 = vrot.slane %v140_v8, 2 }
  0xa5   :  { %v102_v11 = vadd.f32 %v101_v9, %v100_v7  ;;  %v142_v12 = vadd.f32 %v141_v10, %v140_v8 }
  0xa7   :  { %v103_v13 = vrot.slane %v102_v11, 1  ;;  %v143_v14 = vrot.slane %v142_v12, 1 }
  0xa9   :  { %v104_v17 = vadd.f32 %v103_v13, %v102_v11  ;;  %v144_v18 = vadd.f32 %v143_v14, %v142_v12 }
  0xab   :  { %v107_v19 = vadd.f32 %v106_v15, %v104_v17  ;;  %v147_v20 = vadd.f32 %v146_v16, %v144_v18 }
  0xad   :  { %v178_v21 = vmul.f32 -1.442695, %v107_v19  ;;  %v184_v22 = vmul.f32 -1.442695, %v147_v20 }
  0xaf   :  { %194 = vpow2.f32 %v178_v21 }
  0xb0   :  { %196 = vpow2.f32 %v184_v22 }
  0xbc   :  { %v195_v23 = vpop.eup %194 }
  0xbd   :  { %v197_v24 = vpop.eup %196  ;;  %v111_v25 = vadd.f32 1.0, %v195_v23 }
  0xbe   :  { %v151_v26 = vadd.f32 1.0, %v197_v24 }
  0xbf   :  { %198 = vrcp.f32 %v111_v25 }
  0xc0   :  { %200 = vrcp.f32 %v151_v26 }
  0xcc   :  { %v199_v27 = vpop.eup %198 }
  0xcd   :  { %v201_v28 = vpop.eup %200  ;;  %114 = vst [vmem:[#allocation5] sm:$0x1] %v199_v27 }
  0xce   :  { %154 = vst [vmem:[#allocation5 + $0x1] sm:$0x1] %v201_v28 }
  0xcf   :  { %225 = shalt.err (!%p222_p9)
}
  0xd0   :  { %164 = dma.vmem_to_hbm [thread:$0]  %s162_s27, 32, %s298_s2, [#allocation3]  }
  0xd1   :  { %236 = dma.done.wait [#allocation3], 32  }
  0xd2   :  { %237 = vsyncadd [#allocation3], 4294967264 }
  0xd3   :  { %168 = vsyncpa [#allocation3], 1 }
  0xd4   :  { %169 = vsyncpa [#allocation4], 1 }

</bundles_post_ra>
